<compile_context>
chip_gen: v6e
topology: v6e:2x2x1
jax: 0.10.0
libtpu: 0.0.40
codegen_flags: <defaults>
</compile_context>

<pallas_src>
import functools

import numpy as np
import jax
import jax.numpy as jnp
from jax.experimental import pallas as pl
from jax.experimental.pallas import tpu as pltpu


def _round_up(x: int, m: int) -> int:
    return ((x + m - 1) // m) * m


def _src_indices(t_in: int, t_out: int):
    """Source rows / weights matching PyTorch F.interpolate(mode='linear',
    align_corners=False): y[j] = (1 - frac[j]) * h[i0[j]] + frac[j] * h[i1[j]]."""
    scale = t_in / t_out
    j = np.arange(t_out, dtype=np.float64)
    src = np.maximum((j + 0.5) * scale - 0.5, 0.0)          # left-edge clamp
    i0 = np.minimum(np.floor(src).astype(np.int64), t_in - 1)
    i1 = np.minimum(i0 + 1, t_in - 1)                        # right-edge clamp
    frac = np.clip(src - i0, 0.0, 1.0)
    return i0, i1, frac


def _pick_ta_tile(t_text: int, t_audio: int, win_cap: int = 256, max_tile: int = 512) -> int:
    """Largest T_audio tile (multiple of 8, <= max_tile) whose source window fits win_cap."""
    cand = min(max_tile, _round_up(t_audio, 8))
    cand -= cand % 8
    cand = max(cand, 8)
    while cand > 8:
        approx_win = _round_up(int(np.ceil(cand * t_text / t_audio)) + 10, 8)
        if approx_win <= win_cap:
            break
        cand -= 8
    return cand


@functools.lru_cache(maxsize=None)
def _interp_plan(t_in: int, t_out: int, ta_tile: int):
    """Banded-interp plan: per-tile 8-aligned window starts + per-row local (c0, c1, frac).
    Rows past t_out (ragged-tile padding) get c0 = c1 = -1 -> zero band row."""
    i0, i1, frac = _src_indices(t_in, t_out)
    t_out_pad = _round_up(t_out, ta_tile)
    n_ta = t_out_pad // ta_tile

    starts = np.zeros((n_ta,), np.int32)
    c0 = np.full((n_ta, ta_tile), -1, np.int32)
    c1 = np.full((n_ta, ta_tile), -1, np.int32)
    fr = np.zeros((n_ta, ta_tile), np.float32)
    span = 8
    for t in range(n_ta):
        lo_j = t * ta_tile
        hi_j = min(lo_j + ta_tile, t_out)
        nv = hi_j - lo_j
        lo = int(i0[lo_j:hi_j].min())
        hi = int(i1[lo_j:hi_j].max())
        st = (lo // 8) * 8                     # keep dynamic-slice starts 8-aligned
        starts[t] = st
        span = max(span, hi - st + 1)
        c0[t, :nv] = (i0[lo_j:hi_j] - st).astype(np.int32)
        c1[t, :nv] = (i1[lo_j:hi_j] - st).astype(np.int32)
        fr[t, :nv] = frac[lo_j:hi_j].astype(np.float32)
    win = _round_up(span, 8)
    t_pad = max(_round_up(t_in, 8), int(starts.max()) + win)
    return starts, c0[..., None], c1[..., None], fr[..., None], win, t_pad, t_out_pad


def _decoder_kernel(t_text, win, g, c_dim,
                    starts_ref, x_ref, w_ref, b_ref, c0_ref, c1_ref, f_ref,
                    o_ref, h_ref):
    # starts_ref: SMEM (n_ta,) int32 window starts (scalar prefetch)
    # x_ref: (T_text, D)   w_ref: (D, TN)   b_ref: (1, TN) f32
    # c0/c1: (ta_tile, 1) int32   f_ref: (ta_tile, 1) f32
    # o_ref: (ta_tile, TN)  [packed]  or  (g, ta_tile, C)  [direct 4D]
    # h_ref: VMEM scratch (T_pad, TN) in compute dtype
    ti = pl.program_id(2)
    t_pad, tn = h_ref.shape

    @pl.when(ti == 0)
    def _():
        # 1x1 conv == matmul over D_model; hoisted: once per (batch, column-block).
        h = jnp.dot(x_ref[...], w_ref[...], preferred_element_type=jnp.float32)
        h = h + b_ref[...]
        h_ref[pl.ds(0, t_text), :] = h.astype(h_ref.dtype)
        if t_pad > t_text:   # static: zero only the alignment-pad rows
            h_ref[pl.ds(t_text, t_pad - t_text), :] = jnp.zeros(
                (t_pad - t_text, tn), h_ref.dtype)

    # Banded linear interpolation: this T_audio tile touches only `win` source rows.
    s = pl.multiple_of(starts_ref[ti], 8)
    h_win = h_ref[pl.ds(s, win), :]                                   # (win, TN)

    ta_tile = c0_ref.shape[0]
    cols = jax.lax.broadcasted_iota(jnp.int32, (ta_tile, win), 1)
    f = f_ref[...]                                                    # (ta_tile, 1) f32
    band = (jnp.where(cols == c0_ref[...], 1.0 - f, 0.0)
            + jnp.where(cols == c1_ref[...], f, 0.0)).astype(h_ref.dtype)

    if g is None:
        # Packed (B, T_audio_pad, KC_pad) layout.
        y = jnp.dot(band, h_win, preferred_element_type=jnp.float32)
        o_ref[...] = y.astype(o_ref.dtype)
    else:
        # Direct (B, K, T_audio_pad, C) layout: one lane-dense dot + store per codebook.
        for kk in range(g):
            yk = jnp.dot(band, h_win[:, kk * c_dim:(kk + 1) * c_dim],
                         preferred_element_type=jnp.float32)
            o_ref[kk, :, :] = yk.astype(o_ref.dtype)


def decoder_forward(x_emb, w, b, K, C, T_audio, *,
                    compute_dtype=jnp.bfloat16, out_dtype=None,
                    ta_tile=None, tn_target=512):
    """x_emb: (B, T_text, D_model); w: (K*C, D_model) (PyTorch conv1d weight squeezed);
    b: (K*C,).  Returns logits (B, K, T_audio, C), matching Decoder.forward."""
    B, T_text, D = x_emb.shape
    KC = K * C
    assert w.shape == (KC, D) and b.shape == (KC,)
    out_dtype = out_dtype or x_emb.dtype

    direct_4d = (C % 128 == 0)              # lane-dense 4D emit, no wrapper transpose

    ta_tile = ta_tile or _pick_ta_tile(T_text, T_audio)
    assert ta_tile % 8 == 0
    starts_np, c0_np, c1_np, fr_np, WIN, T_pad, T_audio_pad = _interp_plan(
        T_text, T_audio, ta_tile)
    n_ta = T_audio_pad // ta_tile

    cs = jnp.dtype(compute_dtype).itemsize
    osz = jnp.dtype(out_dtype).itemsize

    def vmem_need(tn):
        return int(2 * T_text * D * cs        # X block (double-buffered constant)
                   + 2 * D * tn * cs          # W column block
                   + 2 * tn * 4               # bias block
                   + 6 * ta_tile * 4          # c0 / c1 / frac blocks
                   + 2 * ta_tile * tn * osz   # output tile
                   + T_pad * tn * cs          # h scratch
                   + T_text * tn * 4          # projection f32 transient
                   + 3 * ta_tile * WIN * 4)   # band-build transients

    try:
        vmem_cap = int(pltpu.get_tpu_info().vmem_capacity_bytes)
    except Exception:
        vmem_cap = 64 * 2**20                 # conservative fallback (v7x per-core VMEM)
    budget = int(0.85 * vmem_cap)

    if direct_4d:
        KC_cols = KC
        g_cands = sorted({d for d in range(1, K + 1)
                          if K % d == 0 and d * C <= max(tn_target, C)}, reverse=True)
        g = next((d for d in g_cands if vmem_need(d * C) <= budget), g_cands[-1])
        TN = g * C
    else:
        KC_cols = _round_up(KC, 128)
        g = None
        tn_cands = sorted({t for t in (tn_target, 512, 256, 128)
                           if t <= KC_cols and KC_cols % t == 0 and t % 128 == 0},
                          reverse=True) or [128]
        TN = next((t for t in tn_cands if vmem_need(t) <= budget), tn_cands[-1])
    need = vmem_need(TN)
    if need > budget:
        raise ValueError(
            f"Decoder kernel needs ~{need / 2**20:.1f} MiB VMEM (budget "
            f"{budget / 2**20:.1f} MiB); reduce T_text*D or split the projection out.")
    n_kc = KC_cols // TN
    vmem_limit = int(min(budget, max(4 * need, 32 * 2**20)))

    # Operands (weights padded to the lane-dense column count; padded cols produce zeros).
    x_c = x_emb.astype(compute_dtype)
    w_t = jnp.zeros((D, KC_cols), compute_dtype).at[:, :KC].set(
        jnp.asarray(w, compute_dtype).T)
    b2 = jnp.zeros((1, KC_cols), jnp.float32).at[:, :KC].set(jnp.asarray(b, jnp.float32))
    starts = jnp.asarray(starts_np)                     # (n_ta,) int32, scalar-prefetched
    c0 = jnp.asarray(c0_np)                             # (n_ta, ta_tile, 1) int32
    c1 = jnp.asarray(c1_np)
    fr = jnp.asarray(fr_np)                             # (n_ta, ta_tile, 1) f32

    if direct_4d:
        out_shape = jax.ShapeDtypeStruct((B, K, T_audio_pad, C), out_dtype)
        out_spec = pl.BlockSpec((None, g, ta_tile, C),
                                lambda bi, ci, ti, ws: (bi, ci, ti, 0))
    else:
        out_shape = jax.ShapeDtypeStruct((B, T_audio_pad, KC_cols), out_dtype)
        out_spec = pl.BlockSpec((None, ta_tile, TN),
                                lambda bi, ci, ti, ws: (bi, ti, ci))

    flops = int(2 * B * (T_text * D * KC_cols + T_audio_pad * WIN * KC_cols))
    bytes_accessed = int(B * T_text * D * cs + D * KC_cols * cs + KC_cols * 4
                         + n_ta * (3 * ta_tile + 1) * 4
                         + B * T_audio_pad * KC_cols * osz)

    kernel = functools.partial(_decoder_kernel, T_text, WIN, g, C)

    y = pl.pallas_call(
        kernel,
        out_shape=out_shape,
        grid_spec=pltpu.PrefetchScalarGridSpec(
            num_scalar_prefetch=1,
            grid=(B, n_kc, n_ta),
            in_specs=[
                pl.BlockSpec((None, T_text, D), lambda bi, ci, ti, ws: (bi, 0, 0)),
                pl.BlockSpec((D, TN), lambda bi, ci, ti, ws: (0, ci)),
                pl.BlockSpec((1, TN), lambda bi, ci, ti, ws: (0, ci)),
                pl.BlockSpec((None, ta_tile, 1), lambda bi, ci, ti, ws: (ti, 0, 0)),
                pl.BlockSpec((None, ta_tile, 1), lambda bi, ci, ti, ws: (ti, 0, 0)),
                pl.BlockSpec((None, ta_tile, 1), lambda bi, ci, ti, ws: (ti, 0, 0)),
            ],
            out_specs=out_spec,
            scratch_shapes=[pltpu.VMEM((T_pad, TN), compute_dtype)],
        ),
        compiler_params=pltpu.CompilerParams(
            dimension_semantics=("parallel", "parallel", "arbitrary"),
            vmem_limit_bytes=vmem_limit),
        cost_estimate=pl.CostEstimate(flops=flops, transcendentals=0,
                                      bytes_accessed=bytes_accessed),
    )(starts, x_c, w_t, b2, c0, c1, fr)

    if direct_4d:
        return y[:, :, :T_audio, :]                     # already (B, K, T_audio, C)
    y = y[:, :T_audio, :KC]
    return y.reshape(B, T_audio, K, C).transpose(0, 2, 1, 3)


def _reference_forward(x_emb, w, b, K, C, T_audio):
    """Pure-JAX f32 reference (gather + lerp), independent of the banded plan."""
    B, T_text, D = x_emb.shape
    i0, i1, frac = _src_indices(T_text, T_audio)
    h = jnp.einsum("btd,od->bto", x_emb.astype(jnp.float32),
                   w.astype(jnp.float32)) + b.astype(jnp.float32)
    fr = jnp.asarray(frac, jnp.float32)[None, :, None]
    y = (1.0 - fr) * h[:, i0, :] + fr * h[:, i1, :]
    return y.reshape(B, T_audio, K, C).transpose(0, 2, 1, 3)


if __name__ == "__main__":
    key = jax.random.PRNGKey(0)

    # Case 1: small C (packed-layout fallback path), lab-sized shapes.
    B, T_text, D_model, K, C, T_audio = 2, 8, 32, 4, 8, 16
    k1, k2, k3, key = jax.random.split(key, 4)
    x_emb = jax.random.normal(k1, (B, T_text, D_model), dtype=jnp.float32)
    w = jax.random.normal(k2, (K * C, D_model), dtype=jnp.float32) * 0.05
    b = jax.random.normal(k3, (K * C,), dtype=jnp.float32) * 0.05

    ref = _reference_forward(x_emb, w, b, K, C, T_audio)

    out_f32 = jax.block_until_ready(
        decoder_forward(x_emb, w, b, K, C, T_audio, compute_dtype=jnp.float32))
    assert out_f32.shape == (B, K, T_audio, C), out_f32.shape
    assert jnp.allclose(out_f32, ref, atol=1e-5, rtol=1e-5), \
        float(jnp.max(jnp.abs(out_f32 - ref)))

    out_bf16 = jax.block_until_ready(decoder_forward(x_emb, w, b, K, C, T_audio))
    assert out_bf16.shape == (B, K, T_audio, C), out_bf16.shape
    assert jnp.allclose(out_bf16, ref, atol=3e-2, rtol=3e-2), \
        float(jnp.max(jnp.abs(out_bf16 - ref)))

    # Case 2: C multiple of 128 -> direct (B, K, T_audio, C) emit (no wrapper transpose).
    B2, T_text2, D2, K2, C2, T_audio2 = 1, 8, 32, 2, 128, 16
    k1, k2, k3, key = jax.random.split(key, 4)
    x2 = jax.random.normal(k1, (B2, T_text2, D2), dtype=jnp.float32)
    w2 = jax.random.normal(k2, (K2 * C2, D2), dtype=jnp.float32) * 0.05
    b2v = jax.random.normal(k3, (K2 * C2,), dtype=jnp.float32) * 0.05

    ref2 = _reference_forward(x2, w2, b2v, K2, C2, T_audio2)
    out2_f32 = jax.block_until_ready(
        decoder_forward(x2, w2, b2v, K2, C2, T_audio2, compute_dtype=jnp.float32))
    assert out2_f32.shape == (B2, K2, T_audio2, C2), out2_f32.shape
    assert jnp.allclose(out2_f32, ref2, atol=1e-5, rtol=1e-5), \
        float(jnp.max(jnp.abs(out2_f32 - ref2)))

    out2_bf16 = jax.block_until_ready(decoder_forward(x2, w2, b2v, K2, C2, T_audio2))
    assert jnp.allclose(out2_bf16, ref2, atol=3e-2, rtol=3e-2), \
        float(jnp.max(jnp.abs(out2_bf16 - ref2)))

    print("KERNEL_OK")
</pallas_src>

<mosaic_0001>
module attributes {stable_mosaic.version = 11 : i64} {
  func.func @_decoder_kernel(%arg0: i32, %arg1: i32, %arg2: i32, %arg3: memref<1xi32, #tpu.memory_space<smem>>, %arg4: memref<1x8x32xf32, #tpu.memory_space<vmem>>, %arg5: memref<32x128xf32, #tpu.memory_space<vmem>>, %arg6: memref<1x128xf32, #tpu.memory_space<vmem>>, %arg7: memref<1x16x1xi32, #tpu.memory_space<vmem>>, %arg8: memref<1x16x1xi32, #tpu.memory_space<vmem>>, %arg9: memref<1x16x1xf32, #tpu.memory_space<vmem>>, %arg10: memref<1x16x128xf32, #tpu.memory_space<vmem>>, %arg11: memref<8x128xf32, #tpu.memory_space<vmem>>) attributes {dimension_semantics = [#tpu.dimension_semantics<parallel>, #tpu.dimension_semantics<parallel>, #tpu.dimension_semantics<arbitrary>], iteration_bounds = array<i64: 2, 1, 1>, scalar_prefetch = 1 : i64, scratch_operands = 1 : i64, tpu.core_type = #tpu.core_type<tc>, window_params = [{transform_indices = @transform_0, window_bounds = array<i64: 1, 8, 32>}, {transform_indices = @transform_1, window_bounds = array<i64: 32, 128>}, {transform_indices = @transform_2, window_bounds = array<i64: 1, 128>}, {transform_indices = @transform_3, window_bounds = array<i64: 1, 16, 1>}, {transform_indices = @transform_4, window_bounds = array<i64: 1, 16, 1>}, {transform_indices = @transform_5, window_bounds = array<i64: 1, 16, 1>}, {transform_indices = @transform_6, window_bounds = array<i64: 1, 16, 128>}]} {
    %c0_i32 = arith.constant 0 : i32
    %0 = arith.cmpi eq, %arg2, %c0_i32 : i32
    %1 = arith.extui %0 : i1 to i32
    %c0_i32_0 = arith.constant 0 : i32
    %2 = arith.cmpi ne, %1, %c0_i32_0 : i32
    scf.if %2 {
      %c0_16 = arith.constant 0 : index
      %c0_17 = arith.constant 0 : index
      %c0_18 = arith.constant 0 : index
      %34 = vector.load %arg4[%c0_16, %c0_17, %c0_18] : memref<1x8x32xf32, #tpu.memory_space<vmem>>, vector<1x8x32xf32>
      %35 = vector.shape_cast %34 : vector<1x8x32xf32> to vector<8x32xf32>
      %c0_19 = arith.constant 0 : index
      %c0_20 = arith.constant 0 : index
      %36 = vector.load %arg5[%c0_19, %c0_20] : memref<32x128xf32, #tpu.memory_space<vmem>>, vector<32x128xf32>
      %cst_21 = arith.constant dense<0.000000e+00> : vector<8x128xf32>
      %37 = tpu.matmul %35, %36, %cst_21 {dimension_numbers = #tpu.dot_dimension_numbers<[1], [0], [0], [1], [0, 0, 1, 1], [], []>} : vector<8x32xf32>, vector<32x128xf32>, vector<8x128xf32> -> vector<8x128xf32>
      %c0_22 = arith.constant 0 : index
      %c0_23 = arith.constant 0 : index
      %38 = vector.load %arg6[%c0_22, %c0_23] : memref<1x128xf32, #tpu.memory_space<vmem>>, vector<1x128xf32>
      %39 = vector.broadcast %38 : vector<1x128xf32> to vector<8x128xf32>
      %40 = arith.addf %37, %39 : vector<8x128xf32>
      %c0_24 = arith.constant 0 : index
      %c0_25 = arith.constant 0 : index
      %41 = vector.load %arg11[%c0_24, %c0_25] : memref<8x128xf32, #tpu.memory_space<vmem>>, vector<8x128xf32>
      tpu.vector_store %arg11[%c0_24, %c0_25], %40 {strides = array<i32>} : memref<8x128xf32, #tpu.memory_space<vmem>>, vector<8x128xf32>,
    } else {
    }
    %3 = arith.index_cast %arg2 : i32 to index
    %4 = memref.load %arg3[%3] : memref<1xi32, #tpu.memory_space<smem>>
    %5 = tpu.assume_multiple %4, 8 : i32
    %6 = arith.index_cast %5 : i32 to index
    %c0 = arith.constant 0 : index
    %7 = vector.load %arg11[%6, %c0] : memref<8x128xf32, #tpu.memory_space<vmem>>, vector<8x128xf32>
    %8 = tpu.iota {dimensions = array<i32: 1>} : vector<16x8xi32>
    %c0_1 = arith.constant 0 : index
    %c0_2 = arith.constant 0 : index
    %c0_3 = arith.constant 0 : index
    %9 = vector.load %arg9[%c0_1, %c0_2, %c0_3] : memref<1x16x1xf32, #tpu.memory_space<vmem>>, vector<1x16x1xf32>
    %10 = vector.shape_cast %9 : vector<1x16x1xf32> to vector<16x1xf32>
    %c0_4 = arith.constant 0 : index
    %c0_5 = arith.constant 0 : index
    %c0_6 = arith.constant 0 : index
    %11 = vector.load %arg7[%c0_4, %c0_5, %c0_6] : memref<1x16x1xi32, #tpu.memory_space<vmem>>, vector<1x16x1xi32>
    %12 = vector.shape_cast %11 : vector<1x16x1xi32> to vector<16x1xi32>
    %13 = vector.broadcast %12 : vector<16x1xi32> to vector<16x8xi32>
    %14 = arith.cmpi eq, %8, %13 : vector<16x8xi32>
    %cst = arith.constant 1.000000e+00 : f32
    %15 = vector.broadcast %cst : f32 to vector<16x1xf32>
    %16 = arith.subf %15, %10 : vector<16x1xf32>
    %cst_7 = arith.constant 0.000000e+00 : f32
    %17 = vector.shape_cast %16 : vector<16x1xf32> to vector<16x1xf32>
    %18 = vector.broadcast %17 : vector<16x1xf32> to vector<16x8xf32>
    %19 = vector.broadcast %cst_7 : f32 to vector<16x8xf32>
    %20 = arith.select %14, %18, %19 : vector<16x8xi1>, vector<16x8xf32>
    %c0_8 = arith.constant 0 : index
    %c0_9 = arith.constant 0 : index
    %c0_10 = arith.constant 0 : index
    %21 = vector.load %arg8[%c0_8, %c0_9, %c0_10] : memref<1x16x1xi32, #tpu.memory_space<vmem>>, vector<1x16x1xi32>
    %22 = vector.shape_cast %21 : vector<1x16x1xi32> to vector<16x1xi32>
    %23 = vector.broadcast %22 : vector<16x1xi32> to vector<16x8xi32>
    %24 = arith.cmpi eq, %8, %23 : vector<16x8xi32>
    %cst_11 = arith.constant 0.000000e+00 : f32
    %25 = vector.shape_cast %10 : vector<16x1xf32> to vector<16x1xf32>
    %26 = vector.broadcast %25 : vector<16x1xf32> to vector<16x8xf32>
    %27 = vector.broadcast %cst_11 : f32 to vector<16x8xf32>
    %28 = arith.select %24, %26, %27 : vector<16x8xi1>, vector<16x8xf32>
    %29 = arith.addf %20, %28 : vector<16x8xf32>
    %cst_12 = arith.constant dense<0.000000e+00> : vector<16x128xf32>
    %30 = tpu.matmul %29, %7, %cst_12 {dimension_numbers = #tpu.dot_dimension_numbers<[1], [0], [0], [1], [0, 0, 1, 1], [], []>} : vector<16x8xf32>, vector<8x128xf32>, vector<16x128xf32> -> vector<16x128xf32>
    %c0_13 = arith.constant 0 : index
    %c0_14 = arith.constant 0 : index
    %c0_15 = arith.constant 0 : index
    %31 = vector.load %arg10[%c0_13, %c0_14, %c0_15] : memref<1x16x128xf32, #tpu.memory_space<vmem>>, vector<1x16x128xf32>
    %32 = vector.shape_cast %31 : vector<1x16x128xf32> to vector<16x128xf32>
    %33 = vector.shape_cast %30 : vector<16x128xf32> to vector<1x16x128xf32>
    tpu.vector_store %arg10[%c0_13, %c0_14, %c0_15], %33 {strides = array<i32>} : memref<1x16x128xf32, #tpu.memory_space<vmem>>, vector<1x16x128xf32>,
    return
  }
  func.func @transform_0(%arg0: i32, %arg1: i32, %arg2: i32, %arg3: memref<1xi32, #tpu.memory_space<smem>>) -> (i32, i32, i32) {
    %c0_i32 = arith.constant 0 : i32
    %c0_i32_0 = arith.constant 0 : i32
    %c0_i32_1 = arith.constant 0 : i32
    return %arg0, %c0_i32, %c0_i32_0 : i32, i32, i32
  }
  func.func @transform_1(%arg0: i32, %arg1: i32, %arg2: i32, %arg3: memref<1xi32, #tpu.memory_space<smem>>) -> (i32, i32) {
    %c0_i32 = arith.constant 0 : i32
    %c0_i32_0 = arith.constant 0 : i32
    return %c0_i32, %arg1 : i32, i32
  }
  func.func @transform_2(%arg0: i32, %arg1: i32, %arg2: i32, %arg3: memref<1xi32, #tpu.memory_space<smem>>) -> (i32, i32) {
    %c0_i32 = arith.constant 0 : i32
    %c0_i32_0 = arith.constant 0 : i32
    return %c0_i32, %arg1 : i32, i32
  }
  func.func @transform_3(%arg0: i32, %arg1: i32, %arg2: i32, %arg3: memref<1xi32, #tpu.memory_space<smem>>) -> (i32, i32, i32) {
    %c0_i32 = arith.constant 0 : i32
    %c0_i32_0 = arith.constant 0 : i32
    %c0_i32_1 = arith.constant 0 : i32
    return %arg2, %c0_i32, %c0_i32_0 : i32, i32, i32
  }
  func.func @transform_4(%arg0: i32, %arg1: i32, %arg2: i32, %arg3: memref<1xi32, #tpu.memory_space<smem>>) -> (i32, i32, i32) {
    %c0_i32 = arith.constant 0 : i32
    %c0_i32_0 = arith.constant 0 : i32
    %c0_i32_1 = arith.constant 0 : i32
    return %arg2, %c0_i32, %c0_i32_0 : i32, i32, i32
  }
  func.func @transform_5(%arg0: i32, %arg1: i32, %arg2: i32, %arg3: memref<1xi32, #tpu.memory_space<smem>>) -> (i32, i32, i32) {
    %c0_i32 = arith.constant 0 : i32
    %c0_i32_0 = arith.constant 0 : i32
    %c0_i32_1 = arith.constant 0 : i32
    return %arg2, %c0_i32, %c0_i32_0 : i32, i32, i32
  }
  func.func @transform_6(%arg0: i32, %arg1: i32, %arg2: i32, %arg3: memref<1xi32, #tpu.memory_space<smem>>) -> (i32, i32, i32) {
    %c0_i32 = arith.constant 0 : i32
    return %arg0, %arg2, %arg1 : i32, i32, i32
  }
}

</mosaic_0001>

<bundles_post_ra>
// kernel: tpu_custom_call.1
= control target key start
LH: loop header
LB: loop body
LE: loop exit
PB: predicated region body
PF: predicated region fallthrough
CT: control target
= control target key end

     0   :  { %s1146_s0 = inlined_call_operand.<no memory space> [shape: s32[1], index: 0, kind: input, shape index: {}]   ;;  %s1147_s1 = inlined_call_operand.vmem [shape: f32[2,8,32], index: 1, kind: input, shape index: {}]   ;;  %s1148_s2 = inlined_call_operand.vmem [shape: f32[32,128], index: 2, kind: input, shape index: {}]   ;;  %s1149_s3 = inlined_call_operand.vmem [shape: f32[1,128], index: 3, kind: input, shape index: {}]   ;;  %s1150_s4 = inlined_call_operand.vmem [shape: s32[1,16,1], index: 4, kind: input, shape index: {}]   ;;  %s1151_s5 = inlined_call_operand.vmem [shape: s32[1,16,1], index: 5, kind: input, shape index: {}]   ;;  %s1152_s6 = inlined_call_operand.vmem [shape: f32[1,16,1], index: 6, kind: input, shape index: {}]   ;;  %s1153_s7 = inlined_call_operand.hbm [shape: f32[2,16,128], index: 7, kind: output, shape index: {}]  }
   0x1   :  { %12 = sst [smem:[#allocation4]] %s1146_s0 }
   0x2   :  { %13 = vsyncpa [#allocation6], 0 }
   0x3   :  { %15 = vsyncpa [#allocation6 + $0x1], 0  ;;  %s996_s26 = smov 0   ;;  %s998_s27 = smov 0  }
   0x4   :  { %s1000_s28 = smov 0   ;;  %s1002_s29 = smov 0  }
   0x5   :  { %s1004_s30 = smov 0   ;;  %s1006_s8 = smov 0  }
   0x6 LB: > { %s761_s0 = sadd.s32 4294967295, %s945_s8   ;;  %s762_s9 = sadd.s32 4294967294, %s945_s8   ;;  %s945_s8 = sphi %s1006_s8, %s21_s8   ;;  %s941_s30 = sphi %s1004_s30, %s1160_s30   ;;  %s937_s29 = sphi %s1002_s29, %s1159_s29   ;;  %s933_s28 = sphi %s1000_s28, %s1158_s28   ;;  %s929_s27 = sphi %s998_s27, %s1157_s27   ;;  %s925_s26 = sphi %s996_s26, %s1156_s26  }
   0x7   : > { %s40_s10 = sadd.s32 1, %s941_s30  ;;  %s207_s11 = sadd.s32 1, %s933_s28 }
   0x8   : > { %p42_p0 = scmp.ge.s32.totalorder %s40_s10, 2  ;;  %p217_p1 = scmp.ne.s32.totalorder %s933_s28, %s929_s27 }
   0x9   : > { %p218_p2 = scmp.eq.s32.totalorder %s761_s0, 1  ;;  %p223_p3 = scmp.ne.s32.totalorder %s929_s27, %s925_s26 }
   0xa   : > { %s1162_s10 = smov (%p42_p0, %s40_s10), 0  ;;  %p224_p5 = scmp.eq.s32.totalorder %s762_s9, 1 }
   0xb   : > { %p1036_p4 = por %p218_p2, %p217_p1  ;;  %s200_s13 = ssub.s32 %s941_s30, %s1162_s10 }
   0xc   : > { %p770_p6 = scmp.ge.s32.totalorder %s945_s8, 1  ;;  %p205_p7 = scmp.eq.s32.totalorder %s200_s13, 0 }
   0xd   : > { %p1043_p8 = por %p224_p5, %p223_p3  ;;  %p286_p9 = scmp.lt.s32.totalorder %s945_s8, 3 }
   0xe   : > { %s1049_s15 = scalar_select %p205_p7, %s933_s28, %s207_s11  }
   0xf   : > { %p287_p10 = pnand %p770_p6, %p286_p9 }
  0x10   : > { %p337_p11 = scmp.lt.s32.totalorder (!%p287_p10), %s937_s29, 1  ;;  %s334_s17 = sand.u32 (!%p287_p10), 1, %s929_s27  }
  0x11   : > { %290 = sbr.rel (%p287_p10) target bundleno = 445 (0x1bd), region = 44  ;;  %s771_s18 = sshll.u32 (!%p287_p10), %s334_s17, 4 }
  0x12   : > { %s336_s19 = scalar_lea.vmem (!%p287_p10), [#allocation5], %s771_s18  ;;  %s782_s21 = sshll.u32 (!%p287_p10), %s937_s29, 8 }
  0x13   : > { %s1099_s24 = scalar_lea.hbm (!%p287_p10), %s1153_s7, %s782_s21  ;;  %s1101_s25 = scalar_lea.sflag (!%p287_p10), [#allocation6], %s334_s17 }
  0x16   : > { %v372_v0 = vld [vmem:[%s1148_s2 + $0x18] sm:$0xff]  ;;  %v947_v1 = vmov 0.0   ;;  %v371_v2 = vld [vmem:[%s1148_s2 + $0x10] sm:$0xff]  ;;  %vm948_vm0 = vmmov 0   ;;  %v463_v3 = vld [vmem:[%s1150_s4 + $0x8] sm:$0xff]  ;;  %s338_s22 = scalar_select %p337_p11, %s937_s29, 1  ;;  %v458_v15 = vlaneseq }
  0x17   : > { %791 = vmatprep.subr.mxu0 %v947_v1  ;;  %799 = vmatprep.mubr.msk.f32.mxu0 %vm948_vm0, %v947_v1  ;;  %v949_v4 = vmov 0   ;;  %v462_v5 = vld [vmem:[%s1150_s4] sm:$0xff]  ;;  %v370_v7 = vld [vmem:[%s1148_s2 + $0x8] sm:$0xff]  ;;  %vm380_vm1 = vcmask 261120   ;;  %vm510_vm5 = vcmask 64512   ;;  %s950_s29 = smov [#allocation5]  }
  0x18   : > { %792 = vmatpush3.msra.mxu0 %v372_v0  ;;  %868 = vset.pattern.permute.xlu1 %v949_v4  ;;  %v460_v6 = vld [vmem:[%s1152_s6] sm:$0xff]  ;;  %s772_s13 = sshll.u32 %s338_s22, 3  ;;  %v487_v12 = vld [vmem:[%s1151_s5 + $0x8] sm:$0xff]  ;;  %v459_v16 = vand.u32 127, %v458_v15  ;;  %s873_s9 = sshll.u32 %s950_s29, 4  ;;  %s874_s9 = int_to_ptr.vmem [resolvable:$false] %s873_s9 }
  0x19   : > { %793 = vmatprep.subr.mxu0 %v947_v1  ;;  %867 = vset.pattern.permute.xlu0 %v949_v4  ;;  %v472_v8 = vsub.f32 1.0, %v460_v6  ;;  %v369_v9 = vld [vmem:[%s1148_s2] sm:$0xff]  ;;  %s340_s20 = scalar_lea.vmem %s1147_s1, %s772_s13  ;;  %v461_v13 = vld [vmem:[%s1152_s6 + $0x8] sm:$0xff]  ;;  %s455_s13 = sld [smem:[#allocation4]] }
  0x1a   : > { %794 = vmatpush3.msra.mxu0 %v371_v2  ;;  %468 = vperm.xlu1 %868, %v463_v3   ;;  %v368_v10 = vld [vmem:[%s340_s20] sm:$0xff]  ;;  %v473_v14 = vsub.f32 1.0, %v461_v13  ;;  %s611_s20 = sshll.u32 %s336_s19, 4  ;;  %s875_s11 = scalar_lea.vmem %s874_s9, 512  ;;  %s1094_s20 = int_to_ptr.vmem [resolvable:$true] %s611_s20 }
  0x1b   : > { %795 = vmatprep.subr.mxu0 %v947_v1  ;;  %465 = vperm.xlu0 %867, %v462_v5   ;;  %v486_v11 = vld [vmem:[%s1151_s5] sm:$0xff]  ;;  %s869_s0 = scalar_lea.vmem %s1094_s20, 256  ;;  %p876_p1 = scmp.lt.s32.totalorder %s1094_s20, %s874_s9 }
  0x1c   : > { %796 = vmatpush3.msra.mxu0 %v370_v7  ;;  %v773_v31 = vld [vmem:[%s1149_s3] ss:$0 sm:$0xff]  ;;  %p870_p12 = scmp.ne.s32.totalorder %s1094_s20, %s869_s0  ;;  %p877_p2 = scmp.lt.s32.totalorder %s875_s11, %s869_s0 }
  0x1d   : > { %797 = vmatprep.subr.mxu0 %v947_v1 }
  0x1e   : > { %798 = vmatpush3.msra.mxu0 %v369_v9  ;;  %476 = vperm.xlu1 %868, %v472_v8   ;;  %p871_p13 = pnand %p870_p12, %p1036_p4  ;;  %p878_p3 = por %p877_p2, %p876_p1 }
  0x1f   : > { %800 = vmatmul.mubr.msk.f32.vlgmr.msra.gmra.mxu0 %vm380_vm1, %v368_v10  ;;  %489 = vperm.xlu0 %867, %v486_v11   ;;  %s456_s16 = scalar_lea.vmem [#allocation2], %s455_s13 }
  0x20   : > { %p872_p0 = pneg %p871_p13 }
  0x22   : > { %498 = vperm.xlu1 %868, %v460_v6   ;;  %p879_p5 = pnand %p878_p3, %p872_p0 }
  0x23   : > { %492 = vperm.xlu0 %867, %v487_v12  }
  0x26   : > { %503 = vperm.xlu1 %868, %v461_v13  }
  0x27   : > { %481 = vperm.xlu0 %867, %v473_v14  }
  0x95   : > { %v469_v17 = vpop.permute.xlu1 %468 }
  0x96   : > { %vm471_vm2 = vcmp.eq.s32.totalorder %v459_v16, %v469_v17  ;;  %v466_v18 = vpop.permute.xlu0 %465 }
  0x97   : > { %vm470_vm3 = vcmp.eq.s32.totalorder %v459_v16, %v466_v18 }
  0x99   : > { %v477_v19 = vpop.permute.xlu1 %476 }
  0x9a   : > { %v490_v20 = vpop.permute.xlu0 %489  ;;  %v484_v21 = vsel %vm470_vm3, %v477_v19, 0.0 }
  0x9b   : > { %vm494_vm4 = vcmp.eq.s32.totalorder %v459_v16, %v490_v20 }
  0x9d   : > { %v499_v22 = vpop.permute.xlu1 %498 }
  0x9e   : > { %v493_v23 = vpop.permute.xlu0 %492  ;;  %v506_v24 = vsel %vm494_vm4, %v499_v22, 0.0 }
  0x9f   : > { %vm495_vm6 = vcmp.eq.s32.totalorder %v459_v16, %v493_v23  ;;  %v508_v25 = vadd.f32 %v506_v24, %v484_v21 }
  0xa1   : > { %v504_v26 = vpop.permute.xlu1 %503  ;;  %804 = vmatprep.mubr.msk.f32.mxu1 %vm510_vm5, %v508_v25 }
  0xa2   : > { %v482_v27 = vpop.permute.xlu0 %481  ;;  %v507_v28 = vsel %vm495_vm6, %v504_v26, 0.0 }
  0xa3   : > { %v485_v29 = vsel %vm471_vm2, %v482_v27, 0.0 }
  0xa4   : > { %v509_v30 = vadd.f32 %v507_v28, %v485_v29 }
  0xdf   : > { %v450_v32 = vpop.f32.mrf.mxu0 }
  0xe0   : > { %v451_v33 = vadd.f32 %v773_v31, %v450_v32 }
  0xe1   : > { %v801_v34 = vpop.f32.mrf.mxu0 }
  0xe2   : > { %454 = vst [vmem:[#allocation2] sm:$0xff] %v451_v33 }
  0xe9   : > { %v457_v35 = vld [vmem:[%s456_s16] sm:$0xff] }
  0xea   : > { %802 = vmatprep.subr.mxu1 %v457_v35 }
  0xeb   : > { %803 = vmatpush3.msra.mxu1 %v457_v35 }
  0xec   : > { %805 = vmatmul.mubr.msk.f32.vlgmr.msra.gmra.mxu1 %vm510_vm5, %v509_v30 }
 0x1ac   : > { %v806_v36 = vpop.f32.mrf.mxu1 }
 0x1ad   : > { %593 = vst [vmem:[%s336_s19 + $0x8] sm:$0xff] %v806_v36 }
 0x1ae   : > { %v583_v37 = vpop.f32.mrf.mxu1 }
 0x1af   : > { %592 = vst [vmem:[%s336_s19] sm:$0xff] %v583_v37 }
 0x1b0   : > { %882 = shalt.err (!%p879_p5)
}
 0x1b1   : > { %s883_s13 = scalar_lea.hbm %s1099_s24, 256  ;;  %s887_s18 = scalar_lea.hbm %s1153_s7, 512 }
 0x1b2   : > { %p884_p6 = scmp.ne.s32.totalorder %s1099_s24, %s883_s13  ;;  %p888_p10 = scmp.lt.s32.totalorder %s1099_s24, %s1153_s7 }
 0x1b3   : > { %p889_p11 = scmp.lt.s32.totalorder %s887_s18, %s883_s13 }
 0x1b4   : > { %p885_p7 = pnand %p884_p6, %p1036_p4 }
 0x1b5   : > { %p890_p12 = por %p889_p11, %p888_p10 }
 0x1b6   : > { %p886_p9 = pneg %p885_p7 }
 0x1b8   : > { %p891_p13 = pnand %p890_p12, %p886_p9 }
 0x1ba   : > { %894 = shalt.err (!%p891_p13)
}
 0x1bb   : > { %s951_s23 = smov 128   ;;  %s952_s22 = smov 8  }
 0x1bc   : > { %807 = dma.vmem_to_hbm [thread:$0]  (%p1036_p4), %s1094_s20, 256, %s1099_s24, %s1101_s25, %s951_s23, %s951_s23, %s952_s22  }
 0x1bd PF: > { %p813_p0 = scmp.ge.s32.totalorder %s945_s8, 2  ;;  %s626_s0 = sand.u32 1, %s925_s26  }
 0x1be   : > { %s627_s29 = scalar_lea.sflag [#allocation6], %s626_s0 }
 0x1bf   : > { %p810_p1 = pnand %p813_p0, %p1043_p8 }
 0x1c1   : > { %p811_p2 = pneg %p810_p1 }
 0x1c3   : > { %920 = dma.done.wait (%p811_p2), %s627_s29, 256  }
 0x1c4   : > { %922 = vsyncadd (%p811_p2), %s627_s29, 4294967040  ;;  %s21_s8 = sadd.s32 1, %s945_s8   ;;  %s1156_s26 = smov %s929_s27 }
 0x1c5   : > { %p18_p3 = scmp.ge.s32.totalorder %s21_s8, 4   ;;  %s1157_s27 = smov %s933_s28 }
 0x1c6   : > { %s1158_s28 = smov %s1049_s15  ;;  %s1159_s29 = smov %s941_s30 }
 0x1c7   : > { %s1160_s30 = smov %s1162_s10  ;;  %20 = sbr.rel (!%p18_p3) target bundleno = 6 (0x6), region = 99 }
 0x1cc   :  { %632 = vsyncpa [#allocation6], 1 }
 0x1cd   :  { %634 = vsyncpa [#allocation6 + $0x1], 1 }

</bundles_post_ra>
